<compile_context>
chip_gen: v6e
topology: v6e:2x2x1
jax: 0.10.0
libtpu: 0.0.40
codegen_flags: <defaults>
</compile_context>

<pallas_src>
import functools

import jax
import jax.numpy as jnp
from jax.experimental import pallas as pl
from jax.experimental.pallas import tpu as pltpu

EPS = 1e-5


def _round_up(a, b):
    return (a + b - 1) // b * b


def _conv_row_kernel(we0_ref, we1_ref, we2_ref, wo0_ref, wo1_ref, wo2_ref,
                     w_ref, b_ref, y_ref, stat_ref, *, ow):
    """One (n, oh) grid step: conv of one output row + BN partial statistics.

    we*_ref : (1, 1, OW+1, Cin)  padded-input row 2*oh + kh, even columns (2*ow)
    wo*_ref : (1, 1, >=OW, Cin)  padded-input row 2*oh + kh, odd  columns (2*ow+1)
    w_ref   : (9, Cin, C_pad)    tap-major weight, VMEM-resident
    b_ref   : (1, C_pad)         conv bias, VMEM-resident
    y_ref   : (1, 1, OW, C_pad)  conv output row (pre-BN), bf16/f32
    stat_ref: (1, 1, 2, C_pad)   per-row (sum, sum_sq) BN partials, f32
    """
    rows_e = (we0_ref, we1_ref, we2_ref)
    rows_o = (wo0_ref, wo1_ref, wo2_ref)
    acc = jnp.zeros((y_ref.shape[2], y_ref.shape[3]), dtype=jnp.float32)
    for kh in range(3):
        ev, ov = rows_e[kh], rows_o[kh]
        taps = (ev[0, 0, 0:ow, :],         # kw = 0 -> input col 2*ow
                ov[0, 0, 0:ow, :],         # kw = 1 -> input col 2*ow + 1
                ev[0, 0, 1:ow + 1, :])     # kw = 2 -> input col 2*ow + 2
        for kw in range(3):
            acc = acc + jnp.dot(taps[kw], w_ref[kh * 3 + kw],
                                preferred_element_type=jnp.float32)
    y = acc + b_ref[...]                                   # f32 bias add
    y_ref[0, 0, :, :] = y.astype(y_ref.dtype)
    # No masking needed: every row of this block is a real output position.
    stat_ref[0, 0, 0:1, :] = jnp.sum(y, axis=0, keepdims=True)
    stat_ref[0, 0, 1:2, :] = jnp.sum(y * y, axis=0, keepdims=True)


def _bn_relu_kernel(y_ref, scale_ref, shift_ref, o_ref):
    """Pass 2: out = max(y * scale + shift, 0) with precomputed per-channel affine."""
    y = y_ref[...].astype(jnp.float32)
    o_ref[...] = jnp.maximum(y * scale_ref[...] + shift_ref[...],
                             0.0).astype(o_ref.dtype)


def conv_block_forward(x, weight, bias, gamma, beta, *, stride=2, padding=1,
                       matmul_dtype=jnp.bfloat16, out_layout="NCHW"):
    """x: (N, Cin, H, W) f32; weight: (Cout, Cin, 3, 3); bias/gamma/beta: (Cout,)."""
    N, Cin, H, W = x.shape
    Cout, wc, KH, KW = weight.shape
    if (KH, KW) != (3, 3) or stride != 2 or padding != 1 or wc != Cin:
        # TODO(synk): only the ConvBlock defaults (3x3, stride 2, pad 1) are
        # specialized here; other configs need a different phase decomposition.
        raise NotImplementedError("kernel is specialized to kernel=3, stride=2, pad=1")

    f32 = jnp.float32
    OH = (H + 2 * padding - KH) // stride + 1
    OW = (W + 2 * padding - KW) // stride + 1
    M = N * OH * OW
    # Lane padding of Cout: 128 is right for v5e and for Cout<=128; on v6e/v7x
    # (256-wide MXU) rounding to 256 when Cout > 128 fills the array better.
    C_pad = _round_up(Cout, 128)
    use_f32_path = jnp.dtype(matmul_dtype) == jnp.dtype(jnp.float32)
    y_dtype = f32 if use_f32_path else jnp.bfloat16

    # --- glue: NHWC + spatial zero-pad, split W into even/odd column phases so
    # every 3x3 tap inside the kernel is a contiguous (OW, Cin) slice.  ~1x input
    # relayout instead of materializing a ~2.25x im2col matrix in HBM.
    xp = jnp.pad(jnp.transpose(x, (0, 2, 3, 1)),
                 ((0, 0), (padding, padding), (padding, padding), (0, 0)))
    we = xp[:, :, 0::2, :].astype(matmul_dtype)    # (N, H+2, OW+1, Cin): cols 2*ow
    wo = xp[:, :, 1::2, :].astype(matmul_dtype)    # (N, H+2, >=OW,  Cin): cols 2*ow+1
    we_cols, wo_cols = we.shape[2], wo.shape[2]

    # weight -> (KH*KW, Cin, C_pad) tap-major; bias/gamma/beta lane-padded.
    w9 = jnp.transpose(weight, (2, 3, 1, 0)).reshape(KH * KW, Cin, Cout)
    w9 = jnp.pad(w9, ((0, 0), (0, 0), (0, C_pad - Cout))).astype(matmul_dtype)
    b_row = jnp.pad(bias.astype(f32), (0, C_pad - Cout)).reshape(1, C_pad)
    g_pad = jnp.pad(gamma.astype(f32), (0, C_pad - Cout))
    be_pad = jnp.pad(beta.astype(f32), (0, C_pad - Cout))

    def row_spec(cols, kh):
        # Input row feeding output row `oh` for vertical tap kh is 2*oh + kh
        # (block size 1 along that dim => block index == element index).
        return pl.BlockSpec((1, 1, cols, Cin),
                            lambda n, oh, kh=kh: (n, 2 * oh + kh, 0, 0))

    itemsize = jnp.dtype(matmul_dtype).itemsize
    cost1 = pl.CostEstimate(
        flops=2 * M * KH * KW * Cin * C_pad,
        transcendentals=0,
        bytes_accessed=(N * OH * 3 * (we_cols + wo_cols) * Cin * itemsize
                        + KH * KW * Cin * C_pad * itemsize
                        + M * C_pad * jnp.dtype(y_dtype).itemsize
                        + N * OH * 2 * C_pad * 4))

    kernel1 = functools.partial(_conv_row_kernel, ow=OW)
    y, stats = pl.pallas_call(
        kernel1,
        out_shape=(jax.ShapeDtypeStruct((N, OH, OW, C_pad), y_dtype),
                   jax.ShapeDtypeStruct((N, OH, 2, C_pad), f32)),
        grid=(N, OH),
        in_specs=[row_spec(we_cols, 0), row_spec(we_cols, 1), row_spec(we_cols, 2),
                  row_spec(wo_cols, 0), row_spec(wo_cols, 1), row_spec(wo_cols, 2),
                  pl.BlockSpec((KH * KW, Cin, C_pad), lambda n, oh: (0, 0, 0)),
                  pl.BlockSpec((1, C_pad), lambda n, oh: (0, 0))],
        out_specs=(pl.BlockSpec((1, 1, OW, C_pad), lambda n, oh: (n, oh, 0, 0)),
                   pl.BlockSpec((1, 1, 2, C_pad), lambda n, oh: (n, oh, 0, 0))),
        compiler_params=pltpu.CompilerParams(
            dimension_semantics=("parallel", "parallel"),
            vmem_limit_bytes=32 * 1024 * 1024),
        cost_estimate=cost1,
    )(we, we, we, wo, wo, wo, w9, b_row)

    # --- tiny per-channel reduction (training-mode BN batch statistics, f32).
    ch_sum = stats[:, :, 0, :].sum(axis=(0, 1))
    ch_sumsq = stats[:, :, 1, :].sum(axis=(0, 1))
    mean = ch_sum / M
    var = jnp.maximum(ch_sumsq / M - mean * mean, 0.0)    # clamp fp cancellation
    inv = jax.lax.rsqrt(var + EPS)
    scale = (g_pad * inv).reshape(1, C_pad)
    shift = (be_pad - mean * g_pad * inv).reshape(1, C_pad)

    # --- pass 2: out = max(y*scale + shift, 0), lane-dense sweep over (M, C_pad).
    # (No input_output_aliases: y is bf16 while the module's output is f32.)
    y2 = y.reshape(M, C_pad)
    grid_m = pl.cdiv(M, 512)
    if grid_m % 2 == 1 and M >= 16:
        grid_m += 1        # keep the parallel axis even so v7x megacore splits it
    TM2 = _round_up(pl.cdiv(M, grid_m), 8)
    M_pad = grid_m * TM2
    if M_pad != M:
        y2 = jnp.pad(y2, ((0, M_pad - M), (0, 0)))

    out2 = pl.pallas_call(
        _bn_relu_kernel,
        out_shape=jax.ShapeDtypeStruct((M_pad, C_pad), x.dtype),
        grid=(grid_m,),
        in_specs=[pl.BlockSpec((TM2, C_pad), lambda i: (i, 0)),
                  pl.BlockSpec((1, C_pad), lambda i: (0, 0)),
                  pl.BlockSpec((1, C_pad), lambda i: (0, 0))],
        out_specs=pl.BlockSpec((TM2, C_pad), lambda i: (i, 0)),
        compiler_params=pltpu.CompilerParams(
            dimension_semantics=("parallel",),
            vmem_limit_bytes=32 * 1024 * 1024),
    )(y2, scale, shift)

    # --- glue: strip channel padding; NHWC is the cheap native layout, NCHW kept
    # as the default to match the PyTorch module's output convention.
    out = out2[:M, :Cout].reshape(N, OH, OW, Cout)
    if out_layout == "NHWC":
        return out
    return jnp.transpose(out, (0, 3, 1, 2))


def _reference(x, weight, bias, gamma, beta, *, stride=2, padding=1):
    y = jax.lax.conv_general_dilated(
        x, weight, (stride, stride), ((padding, padding), (padding, padding)),
        dimension_numbers=("NCHW", "OIHW", "NCHW"))
    y = y + bias[None, :, None, None]
    mean = y.mean(axis=(0, 2, 3), keepdims=True)
    var = ((y - mean) ** 2).mean(axis=(0, 2, 3), keepdims=True)
    xhat = (y - mean) * jax.lax.rsqrt(var + EPS)
    return jnp.maximum(xhat * gamma[None, :, None, None] + beta[None, :, None, None], 0.0)


if __name__ == "__main__":
    key = jax.random.PRNGKey(0)
    k_x, k_w, k_b = jax.random.split(key, 3)

    N, Cin, H, W = 2, 4, 16, 16
    Cout, KH, KW = 8, 3, 3

    x = jax.random.normal(k_x, (N, Cin, H, W), dtype=jnp.float32)
    weight = jax.random.normal(k_w, (Cout, Cin, KH, KW), dtype=jnp.float32) * 0.1
    bias = jax.random.normal(k_b, (Cout,), dtype=jnp.float32) * 0.1
    gamma = jnp.ones((Cout,), dtype=jnp.float32)   # nn.BatchNorm2d default init
    beta = jnp.zeros((Cout,), dtype=jnp.float32)

    ref = _reference(x, weight, bias, gamma, beta)

    # f32-MXU path: tight check of the fused conv + BN + ReLU semantics.
    out_f32 = jax.block_until_ready(
        conv_block_forward(x, weight, bias, gamma, beta, matmul_dtype=jnp.float32))
    assert out_f32.shape == (N, Cout, H // 2, W // 2)
    assert jnp.allclose(out_f32, ref, atol=1e-3, rtol=1e-3)

    # bf16-MXU path (default, fast): bf16 MXU inputs + bf16 intermediate y.
    out = jax.block_until_ready(conv_block_forward(x, weight, bias, gamma, beta))
    assert out.shape == (N, Cout, H // 2, W // 2)
    assert jnp.allclose(out, ref, atol=6e-2, rtol=6e-2)

    print("KERNEL_OK")
</pallas_src>

<mosaic_0001>
module attributes {stable_mosaic.version = 11 : i64} {
  func.func @_conv_row_kernel(%arg0: i32, %arg1: i32, %arg2: memref<1x1x9x4xf32, #tpu.memory_space<vmem>>, %arg3: memref<1x1x9x4xf32, #tpu.memory_space<vmem>>, %arg4: memref<1x1x9x4xf32, #tpu.memory_space<vmem>>, %arg5: memref<1x1x9x4xf32, #tpu.memory_space<vmem>>, %arg6: memref<1x1x9x4xf32, #tpu.memory_space<vmem>>, %arg7: memref<1x1x9x4xf32, #tpu.memory_space<vmem>>, %arg8: memref<9x4x128xf32, #tpu.memory_space<vmem>>, %arg9: memref<1x128xf32, #tpu.memory_space<vmem>>, %arg10: memref<1x1x8x128xf32, #tpu.memory_space<vmem>>, %arg11: memref<1x1x2x128xf32, #tpu.memory_space<vmem>>) attributes {dimension_semantics = [#tpu.dimension_semantics<parallel>, #tpu.dimension_semantics<parallel>], iteration_bounds = array<i64: 2, 8>, scalar_prefetch = 0 : i64, scratch_operands = 0 : i64, tpu.core_type = #tpu.core_type<tc>, window_params = [{transform_indices = @transform_0, window_bounds = array<i64: 1, 1, 9, 4>}, {transform_indices = @transform_1, window_bounds = array<i64: 1, 1, 9, 4>}, {transform_indices = @transform_2, window_bounds = array<i64: 1, 1, 9, 4>}, {transform_indices = @transform_3, window_bounds = array<i64: 1, 1, 9, 4>}, {transform_indices = @transform_4, window_bounds = array<i64: 1, 1, 9, 4>}, {transform_indices = @transform_5, window_bounds = array<i64: 1, 1, 9, 4>}, {pipeline_mode = #tpu.pipeline_mode<synchronous>, transform_indices = @transform_6, window_bounds = array<i64: 9, 4, 128>}, {pipeline_mode = #tpu.pipeline_mode<synchronous>, transform_indices = @transform_7, window_bounds = array<i64: 1, 128>}, {transform_indices = @transform_8, window_bounds = array<i64: 1, 1, 8, 128>}, {transform_indices = @transform_9, window_bounds = array<i64: 1, 1, 2, 128>}]} {
    %cst = arith.constant 0.000000e+00 : f32
    %0 = vector.broadcast %cst : f32 to vector<8x128xf32>
    %c0 = arith.constant 0 : index
    %c0_0 = arith.constant 0 : index
    %c0_1 = arith.constant 0 : index
    %c0_2 = arith.constant 0 : index
    %1 = vector.load %arg2[%c0, %c0_0, %c0_1, %c0_2] : memref<1x1x9x4xf32, #tpu.memory_space<vmem>>, vector<1x1x8x4xf32>
    %2 = vector.shape_cast %1 : vector<1x1x8x4xf32> to vector<8x4xf32>
    %c0_3 = arith.constant 0 : index
    %c0_4 = arith.constant 0 : index
    %c0_5 = arith.constant 0 : index
    %c0_6 = arith.constant 0 : index
    %3 = vector.load %arg5[%c0_3, %c0_4, %c0_5, %c0_6] : memref<1x1x9x4xf32, #tpu.memory_space<vmem>>, vector<1x1x8x4xf32>
    %4 = vector.shape_cast %3 : vector<1x1x8x4xf32> to vector<8x4xf32>
    %c0_7 = arith.constant 0 : index
    %c0_8 = arith.constant 0 : index
    %c1 = arith.constant 1 : index
    %c0_9 = arith.constant 0 : index
    %5 = vector.load %arg2[%c0_7, %c0_8, %c1, %c0_9] : memref<1x1x9x4xf32, #tpu.memory_space<vmem>>, vector<1x1x8x4xf32>
    %6 = vector.shape_cast %5 : vector<1x1x8x4xf32> to vector<8x4xf32>
    %c0_10 = arith.constant 0 : index
    %c0_11 = arith.constant 0 : index
    %c0_12 = arith.constant 0 : index
    %7 = vector.load %arg8[%c0_10, %c0_11, %c0_12] : memref<9x4x128xf32, #tpu.memory_space<vmem>>, vector<1x4x128xf32>
    %8 = vector.shape_cast %7 : vector<1x4x128xf32> to vector<4x128xf32>
    %cst_13 = arith.constant dense<0.000000e+00> : vector<8x128xf32>
    %9 = tpu.matmul %2, %8, %cst_13 {dimension_numbers = #tpu.dot_dimension_numbers<[1], [0], [0], [1], [0, 0, 1, 1], [], []>} : vector<8x4xf32>, vector<4x128xf32>, vector<8x128xf32> -> vector<8x128xf32>
    %10 = arith.addf %0, %9 : vector<8x128xf32>
    %c1_14 = arith.constant 1 : index
    %c0_15 = arith.constant 0 : index
    %c0_16 = arith.constant 0 : index
    %11 = vector.load %arg8[%c1_14, %c0_15, %c0_16] : memref<9x4x128xf32, #tpu.memory_space<vmem>>, vector<1x4x128xf32>
    %12 = vector.shape_cast %11 : vector<1x4x128xf32> to vector<4x128xf32>
    %cst_17 = arith.constant dense<0.000000e+00> : vector<8x128xf32>
    %13 = tpu.matmul %4, %12, %cst_17 {dimension_numbers = #tpu.dot_dimension_numbers<[1], [0], [0], [1], [0, 0, 1, 1], [], []>} : vector<8x4xf32>, vector<4x128xf32>, vector<8x128xf32> -> vector<8x128xf32>
    %14 = arith.addf %10, %13 : vector<8x128xf32>
    %c2 = arith.constant 2 : index
    %c0_18 = arith.constant 0 : index
    %c0_19 = arith.constant 0 : index
    %15 = vector.load %arg8[%c2, %c0_18, %c0_19] : memref<9x4x128xf32, #tpu.memory_space<vmem>>, vector<1x4x128xf32>
    %16 = vector.shape_cast %15 : vector<1x4x128xf32> to vector<4x128xf32>
    %cst_20 = arith.constant dense<0.000000e+00> : vector<8x128xf32>
    %17 = tpu.matmul %6, %16, %cst_20 {dimension_numbers = #tpu.dot_dimension_numbers<[1], [0], [0], [1], [0, 0, 1, 1], [], []>} : vector<8x4xf32>, vector<4x128xf32>, vector<8x128xf32> -> vector<8x128xf32>
    %18 = arith.addf %14, %17 : vector<8x128xf32>
    %c0_21 = arith.constant 0 : index
    %c0_22 = arith.constant 0 : index
    %c0_23 = arith.constant 0 : index
    %c0_24 = arith.constant 0 : index
    %19 = vector.load %arg3[%c0_21, %c0_22, %c0_23, %c0_24] : memref<1x1x9x4xf32, #tpu.memory_space<vmem>>, vector<1x1x8x4xf32>
    %20 = vector.shape_cast %19 : vector<1x1x8x4xf32> to vector<8x4xf32>
    %c0_25 = arith.constant 0 : index
    %c0_26 = arith.constant 0 : index
    %c0_27 = arith.constant 0 : index
    %c0_28 = arith.constant 0 : index
    %21 = vector.load %arg6[%c0_25, %c0_26, %c0_27, %c0_28] : memref<1x1x9x4xf32, #tpu.memory_space<vmem>>, vector<1x1x8x4xf32>
    %22 = vector.shape_cast %21 : vector<1x1x8x4xf32> to vector<8x4xf32>
    %c0_29 = arith.constant 0 : index
    %c0_30 = arith.constant 0 : index
    %c1_31 = arith.constant 1 : index
    %c0_32 = arith.constant 0 : index
    %23 = vector.load %arg3[%c0_29, %c0_30, %c1_31, %c0_32] : memref<1x1x9x4xf32, #tpu.memory_space<vmem>>, vector<1x1x8x4xf32>
    %24 = vector.shape_cast %23 : vector<1x1x8x4xf32> to vector<8x4xf32>
    %c3 = arith.constant 3 : index
    %c0_33 = arith.constant 0 : index
    %c0_34 = arith.constant 0 : index
    %25 = vector.load %arg8[%c3, %c0_33, %c0_34] : memref<9x4x128xf32, #tpu.memory_space<vmem>>, vector<1x4x128xf32>
    %26 = vector.shape_cast %25 : vector<1x4x128xf32> to vector<4x128xf32>
    %cst_35 = arith.constant dense<0.000000e+00> : vector<8x128xf32>
    %27 = tpu.matmul %20, %26, %cst_35 {dimension_numbers = #tpu.dot_dimension_numbers<[1], [0], [0], [1], [0, 0, 1, 1], [], []>} : vector<8x4xf32>, vector<4x128xf32>, vector<8x128xf32> -> vector<8x128xf32>
    %28 = arith.addf %18, %27 : vector<8x128xf32>
    %c4 = arith.constant 4 : index
    %c0_36 = arith.constant 0 : index
    %c0_37 = arith.constant 0 : index
    %29 = vector.load %arg8[%c4, %c0_36, %c0_37] : memref<9x4x128xf32, #tpu.memory_space<vmem>>, vector<1x4x128xf32>
    %30 = vector.shape_cast %29 : vector<1x4x128xf32> to vector<4x128xf32>
    %cst_38 = arith.constant dense<0.000000e+00> : vector<8x128xf32>
    %31 = tpu.matmul %22, %30, %cst_38 {dimension_numbers = #tpu.dot_dimension_numbers<[1], [0], [0], [1], [0, 0, 1, 1], [], []>} : vector<8x4xf32>, vector<4x128xf32>, vector<8x128xf32> -> vector<8x128xf32>
    %32 = arith.addf %28, %31 : vector<8x128xf32>
    %c5 = arith.constant 5 : index
    %c0_39 = arith.constant 0 : index
    %c0_40 = arith.constant 0 : index
    %33 = vector.load %arg8[%c5, %c0_39, %c0_40] : memref<9x4x128xf32, #tpu.memory_space<vmem>>, vector<1x4x128xf32>
    %34 = vector.shape_cast %33 : vector<1x4x128xf32> to vector<4x128xf32>
    %cst_41 = arith.constant dense<0.000000e+00> : vector<8x128xf32>
    %35 = tpu.matmul %24, %34, %cst_41 {dimension_numbers = #tpu.dot_dimension_numbers<[1], [0], [0], [1], [0, 0, 1, 1], [], []>} : vector<8x4xf32>, vector<4x128xf32>, vector<8x128xf32> -> vector<8x128xf32>
    %36 = arith.addf %32, %35 : vector<8x128xf32>
    %c0_42 = arith.constant 0 : index
    %c0_43 = arith.constant 0 : index
    %c0_44 = arith.constant 0 : index
    %c0_45 = arith.constant 0 : index
    %37 = vector.load %arg4[%c0_42, %c0_43, %c0_44, %c0_45] : memref<1x1x9x4xf32, #tpu.memory_space<vmem>>, vector<1x1x8x4xf32>
    %38 = vector.shape_cast %37 : vector<1x1x8x4xf32> to vector<8x4xf32>
    %c0_46 = arith.constant 0 : index
    %c0_47 = arith.constant 0 : index
    %c0_48 = arith.constant 0 : index
    %c0_49 = arith.constant 0 : index
    %39 = vector.load %arg7[%c0_46, %c0_47, %c0_48, %c0_49] : memref<1x1x9x4xf32, #tpu.memory_space<vmem>>, vector<1x1x8x4xf32>
    %40 = vector.shape_cast %39 : vector<1x1x8x4xf32> to vector<8x4xf32>
    %c0_50 = arith.constant 0 : index
    %c0_51 = arith.constant 0 : index
    %c1_52 = arith.constant 1 : index
    %c0_53 = arith.constant 0 : index
    %41 = vector.load %arg4[%c0_50, %c0_51, %c1_52, %c0_53] : memref<1x1x9x4xf32, #tpu.memory_space<vmem>>, vector<1x1x8x4xf32>
    %42 = vector.shape_cast %41 : vector<1x1x8x4xf32> to vector<8x4xf32>
    %c6 = arith.constant 6 : index
    %c0_54 = arith.constant 0 : index
    %c0_55 = arith.constant 0 : index
    %43 = vector.load %arg8[%c6, %c0_54, %c0_55] : memref<9x4x128xf32, #tpu.memory_space<vmem>>, vector<1x4x128xf32>
    %44 = vector.shape_cast %43 : vector<1x4x128xf32> to vector<4x128xf32>
    %cst_56 = arith.constant dense<0.000000e+00> : vector<8x128xf32>
    %45 = tpu.matmul %38, %44, %cst_56 {dimension_numbers = #tpu.dot_dimension_numbers<[1], [0], [0], [1], [0, 0, 1, 1], [], []>} : vector<8x4xf32>, vector<4x128xf32>, vector<8x128xf32> -> vector<8x128xf32>
    %46 = arith.addf %36, %45 : vector<8x128xf32>
    %c7 = arith.constant 7 : index
    %c0_57 = arith.constant 0 : index
    %c0_58 = arith.constant 0 : index
    %47 = vector.load %arg8[%c7, %c0_57, %c0_58] : memref<9x4x128xf32, #tpu.memory_space<vmem>>, vector<1x4x128xf32>
    %48 = vector.shape_cast %47 : vector<1x4x128xf32> to vector<4x128xf32>
    %cst_59 = arith.constant dense<0.000000e+00> : vector<8x128xf32>
    %49 = tpu.matmul %40, %48, %cst_59 {dimension_numbers = #tpu.dot_dimension_numbers<[1], [0], [0], [1], [0, 0, 1, 1], [], []>} : vector<8x4xf32>, vector<4x128xf32>, vector<8x128xf32> -> vector<8x128xf32>
    %50 = arith.addf %46, %49 : vector<8x128xf32>
    %c8 = arith.constant 8 : index
    %c0_60 = arith.constant 0 : index
    %c0_61 = arith.constant 0 : index
    %51 = vector.load %arg8[%c8, %c0_60, %c0_61] : memref<9x4x128xf32, #tpu.memory_space<vmem>>, vector<1x4x128xf32>
    %52 = vector.shape_cast %51 : vector<1x4x128xf32> to vector<4x128xf32>
    %cst_62 = arith.constant dense<0.000000e+00> : vector<8x128xf32>
    %53 = tpu.matmul %42, %52, %cst_62 {dimension_numbers = #tpu.dot_dimension_numbers<[1], [0], [0], [1], [0, 0, 1, 1], [], []>} : vector<8x4xf32>, vector<4x128xf32>, vector<8x128xf32> -> vector<8x128xf32>
    %54 = arith.addf %50, %53 : vector<8x128xf32>
    %c0_63 = arith.constant 0 : index
    %c0_64 = arith.constant 0 : index
    %55 = vector.load %arg9[%c0_63, %c0_64] : memref<1x128xf32, #tpu.memory_space<vmem>>, vector<1x128xf32>
    %56 = vector.broadcast %55 : vector<1x128xf32> to vector<8x128xf32>
    %57 = arith.addf %54, %56 : vector<8x128xf32>
    %c0_65 = arith.constant 0 : index
    %c0_66 = arith.constant 0 : index
    %c0_67 = arith.constant 0 : index
    %c0_68 = arith.constant 0 : index
    %58 = vector.load %arg10[%c0_65, %c0_66, %c0_67, %c0_68] : memref<1x1x8x128xf32, #tpu.memory_space<vmem>>, vector<1x1x8x128xf32>
    %59 = vector.shape_cast %58 : vector<1x1x8x128xf32> to vector<8x128xf32>
    %60 = vector.shape_cast %57 : vector<8x128xf32> to vector<1x1x8x128xf32>
    tpu.vector_store %arg10[%c0_65, %c0_66, %c0_67, %c0_68], %60 {strides = array<i32>} : memref<1x1x8x128xf32, #tpu.memory_space<vmem>>, vector<1x1x8x128xf32>,
    %cst_69 = arith.constant dense<0.000000e+00> : vector<128xf32>
    %61 = vector.multi_reduction <add>, %57, %cst_69 [0] : vector<8x128xf32> to vector<128xf32>
    %62 = vector.shape_cast %61 : vector<128xf32> to vector<1x128xf32>
    %c0_70 = arith.constant 0 : index
    %c0_71 = arith.constant 0 : index
    %c0_72 = arith.constant 0 : index
    %c0_73 = arith.constant 0 : index
    %63 = vector.load %arg11[%c0_70, %c0_71, %c0_72, %c0_73] : memref<1x1x2x128xf32, #tpu.memory_space<vmem>>, vector<1x1x1x128xf32>
    %64 = vector.shape_cast %63 : vector<1x1x1x128xf32> to vector<1x128xf32>
    %65 = vector.shape_cast %62 : vector<1x128xf32> to vector<1x1x1x128xf32>
    tpu.vector_store %arg11[%c0_70, %c0_71, %c0_72, %c0_73], %65 {strides = array<i32>} : memref<1x1x2x128xf32, #tpu.memory_space<vmem>>, vector<1x1x1x128xf32>,
    %66 = arith.mulf %57, %57 : vector<8x128xf32>
    %cst_74 = arith.constant dense<0.000000e+00> : vector<128xf32>
    %67 = vector.multi_reduction <add>, %66, %cst_74 [0] : vector<8x128xf32> to vector<128xf32>
    %68 = vector.shape_cast %67 : vector<128xf32> to vector<1x128xf32>
    %c0_75 = arith.constant 0 : index
    %c0_76 = arith.constant 0 : index
    %c1_77 = arith.constant 1 : index
    %c0_78 = arith.constant 0 : index
    %69 = vector.load %arg11[%c0_75, %c0_76, %c1_77, %c0_78] : memref<1x1x2x128xf32, #tpu.memory_space<vmem>>, vector<1x1x1x128xf32>
    %70 = vector.shape_cast %69 : vector<1x1x1x128xf32> to vector<1x128xf32>
    %71 = vector.shape_cast %68 : vector<1x128xf32> to vector<1x1x1x128xf32>
    tpu.vector_store %arg11[%c0_75, %c0_76, %c1_77, %c0_78], %71 {strides = array<i32>} : memref<1x1x2x128xf32, #tpu.memory_space<vmem>>, vector<1x1x1x128xf32>,
    return
  }
  func.func @transform_0(%arg0: i32, %arg1: i32) -> (i32, i32, i32, i32) {
    %c2_i32 = arith.constant 2 : i32
    %0 = arith.muli %c2_i32, %arg1 : i32
    %c0_i32 = arith.constant 0 : i32
    %1 = arith.addi %0, %c0_i32 : i32
    %c0_i32_0 = arith.constant 0 : i32
    %c0_i32_1 = arith.constant 0 : i32
    %c0_i32_2 = arith.constant 0 : i32
    return %arg0, %1, %c0_i32_0, %c0_i32_1 : i32, i32, i32, i32
  }
  func.func @transform_1(%arg0: i32, %arg1: i32) -> (i32, i32, i32, i32) {
    %c2_i32 = arith.constant 2 : i32
    %0 = arith.muli %c2_i32, %arg1 : i32
    %c1_i32 = arith.constant 1 : i32
    %1 = arith.addi %0, %c1_i32 : i32
    %c0_i32 = arith.constant 0 : i32
    %c0_i32_0 = arith.constant 0 : i32
    %c0_i32_1 = arith.constant 0 : i32
    return %arg0, %1, %c0_i32, %c0_i32_0 : i32, i32, i32, i32
  }
  func.func @transform_2(%arg0: i32, %arg1: i32) -> (i32, i32, i32, i32) {
    %c2_i32 = arith.constant 2 : i32
    %0 = arith.muli %c2_i32, %arg1 : i32
    %c2_i32_0 = arith.constant 2 : i32
    %1 = arith.addi %0, %c2_i32_0 : i32
    %c0_i32 = arith.constant 0 : i32
    %c0_i32_1 = arith.constant 0 : i32
    %c0_i32_2 = arith.constant 0 : i32
    return %arg0, %1, %c0_i32, %c0_i32_1 : i32, i32, i32, i32
  }
  func.func @transform_3(%arg0: i32, %arg1: i32) -> (i32, i32, i32, i32) {
    %c2_i32 = arith.constant 2 : i32
    %0 = arith.muli %c2_i32, %arg1 : i32
    %c0_i32 = arith.constant 0 : i32
    %1 = arith.addi %0, %c0_i32 : i32
    %c0_i32_0 = arith.constant 0 : i32
    %c0_i32_1 = arith.constant 0 : i32
    %c0_i32_2 = arith.constant 0 : i32
    return %arg0, %1, %c0_i32_0, %c0_i32_1 : i32, i32, i32, i32
  }
  func.func @transform_4(%arg0: i32, %arg1: i32) -> (i32, i32, i32, i32) {
    %c2_i32 = arith.constant 2 : i32
    %0 = arith.muli %c2_i32, %arg1 : i32
    %c1_i32 = arith.constant 1 : i32
    %1 = arith.addi %0, %c1_i32 : i32
    %c0_i32 = arith.constant 0 : i32
    %c0_i32_0 = arith.constant 0 : i32
    %c0_i32_1 = arith.constant 0 : i32
    return %arg0, %1, %c0_i32, %c0_i32_0 : i32, i32, i32, i32
  }
  func.func @transform_5(%arg0: i32, %arg1: i32) -> (i32, i32, i32, i32) {
    %c2_i32 = arith.constant 2 : i32
    %0 = arith.muli %c2_i32, %arg1 : i32
    %c2_i32_0 = arith.constant 2 : i32
    %1 = arith.addi %0, %c2_i32_0 : i32
    %c0_i32 = arith.constant 0 : i32
    %c0_i32_1 = arith.constant 0 : i32
    %c0_i32_2 = arith.constant 0 : i32
    return %arg0, %1, %c0_i32, %c0_i32_1 : i32, i32, i32, i32
  }
  func.func @transform_6(%arg0: i32, %arg1: i32) -> (i32, i32, i32) {
    %c0_i32 = arith.constant 0 : i32
    %c0_i32_0 = arith.constant 0 : i32
    %c0_i32_1 = arith.constant 0 : i32
    %c0_i32_2 = arith.constant 0 : i32
    return %c0_i32, %c0_i32_0, %c0_i32_1 : i32, i32, i32
  }
  func.func @transform_7(%arg0: i32, %arg1: i32) -> (i32, i32) {
    %c0_i32 = arith.constant 0 : i32
    %c0_i32_0 = arith.constant 0 : i32
    %c0_i32_1 = arith.constant 0 : i32
    return %c0_i32, %c0_i32_0 : i32, i32
  }
  func.func @transform_8(%arg0: i32, %arg1: i32) -> (i32, i32, i32, i32) {
    %c0_i32 = arith.constant 0 : i32
    %c0_i32_0 = arith.constant 0 : i32
    %c0_i32_1 = arith.constant 0 : i32
    return %arg0, %arg1, %c0_i32, %c0_i32_0 : i32, i32, i32, i32
  }
  func.func @transform_9(%arg0: i32, %arg1: i32) -> (i32, i32, i32, i32) {
    %c0_i32 = arith.constant 0 : i32
    %c0_i32_0 = arith.constant 0 : i32
    %c0_i32_1 = arith.constant 0 : i32
    return %arg0, %arg1, %c0_i32, %c0_i32_0 : i32, i32, i32, i32
  }
}

</mosaic_0001>

<bundles_post_ra>
// kernel: tpu_custom_call.1
= control target key start
LH: loop header
LB: loop body
LE: loop exit
PB: predicated region body
PF: predicated region fallthrough
CT: control target
= control target key end

     0   :  { %15 = vsyncpa [#allocation3], 0  ;;  %s2264_s0 = inlined_call_operand.vmem [shape: f32[2,18,9,4], index: 0, kind: input, shape index: {}]   ;;  %s2265_s1 = inlined_call_operand.vmem [shape: f32[2,18,9,4], index: 1, kind: input, shape index: {}]   ;;  %s2266_s2 = inlined_call_operand.vmem [shape: f32[2,18,9,4], index: 2, kind: input, shape index: {}]   ;;  %s2267_s3 = inlined_call_operand.vmem [shape: f32[2,18,9,4], index: 3, kind: input, shape index: {}]   ;;  %s2268_s4 = inlined_call_operand.vmem [shape: f32[2,18,9,4], index: 4, kind: input, shape index: {}]   ;;  %s2269_s5 = inlined_call_operand.vmem [shape: f32[2,18,9,4], index: 5, kind: input, shape index: {}]   ;;  %s2270_s6 = inlined_call_operand.vmem [shape: f32[9,4,128], index: 6, kind: input, shape index: {}]   ;;  %s2271_s7 = inlined_call_operand.vmem [shape: f32[1,128], index: 7, kind: input, shape index: {}]   ;;  %s2272_s8 = inlined_call_operand.hbm [shape: f32[2,8,8,128], index: 8, kind: output, shape index: {0}]   ;;  %s2273_s9 = inlined_call_operand.hbm [shape: f32[2,8,2,128], index: 9, kind: output, shape index: {1}]  }
   0x1   :  { %17 = vsyncpa [#allocation3 + $0x1], 0 }
   0x2   :  { %18 = vsyncpa [#allocation5], 0 }
   0x3   :  { %20 = vsyncpa [#allocation5 + $0x1], 0  ;;  %s2003_s30 = smov 0   ;;  %s2005_s10 = smov 0  }
   0x4   :  { %s2007_s11 = smov 0   ;;  %s2009_s12 = smov 0  }
   0x5   :  { %s2011_s13 = smov 0   ;;  %s2013_s14 = smov 0  }
   0x6   :  { %s2015_s15 = smov 0   ;;  %s2017_s16 = smov 0  }
   0x7 LB: > { %2281 = sst [smem:[#allocation8_spill]] %s1919_s30  ;;  %s1611_s17 = sadd.s32 4294967295, %s1947_s16   ;;  %s1947_s16 = sphi %s2017_s16, %s26_s16   ;;  %s1943_s15 = sphi %s2015_s15, %s2298_s15   ;;  %s1939_s14 = sphi %s2013_s14, %s2297_s14   ;;  %s1935_s13 = sphi %s2011_s13, %s2296_s13   ;;  %s1931_s12 = sphi %s2009_s12, %s2295_s12   ;;  %s1927_s11 = sphi %s2007_s11, %s2294_s11   ;;  %s1923_s10 = sphi %s2005_s10, %s2300_s10   ;;  %s1919_s30 = sphi %s2003_s30, %s2299_s30  }
   0x8   : > { %2282 = sst [smem:[#allocation9_spill]] %s1927_s11  ;;  %s1612_s18 = sadd.s32 4294967294, %s1947_s16  }
   0x9   : > { %2283 = sst [smem:[#allocation10_spill]] %s1939_s14  ;;  %s35_s19 = sadd.s32 1, %s1939_s14 }
   0xa   : > { %2284 = sst [smem:[#allocation11_spill]] %s1943_s15  ;;  %p36_p0 = scmp.ge.s32.totalorder %s35_s19, 8 }
   0xb   : > { %s38_s20 = sadd.s32 1, %s1943_s15  ;;  %p287_p1 = scmp.ne.s32.totalorder %s1927_s11, %s1923_s10 }
   0xc   : > { %p288_p2 = scmp.eq.s32.totalorder %s1611_s17, 15  ;;  %s2302_s19 = smov (%p36_p0, %s35_s19), 0 }
   0xd   : > { %2285 = sst [smem:[#allocation12_spill]] %s2302_s19  ;;  %s2304_s20 = smov (!%p36_p0, %s38_s20), %s1943_s15 }
   0xe   : > { %s273_s21 = ssub.s32 %s1939_s14, %s2302_s19  ;;  %p2054_p3 = por %p288_p2, %p287_p1 }
   0xf   : > { %p40_p4 = scmp.ge.s32.totalorder %s2304_s20, 2  ;;  %p293_p5 = scmp.ne.s32.totalorder %s1923_s10, %s1919_s30 }
  0x10   : > { %p294_p6 = scmp.eq.s32.totalorder %s1612_s18, 15  ;;  %p1627_p7 = scmp.ge.s32.totalorder %s1947_s16, 1 }
  0x11   : > { %s2306_s20 = smov (%p40_p4, %s2304_s20), 0  ;;  %p438_p9 = scmp.lt.s32.totalorder %s1947_s16, 17 }
  0x12   : > { %2287 = sst [smem:[#allocation13_spill]] %s2306_s20  ;;  %p2063_p8 = por %p294_p6, %p293_p5 }
  0x13   : > { %s272_s24 = ssub.s32 %s1943_s15, %s2306_s20  ;;  %s277_s25 = sadd.s32 1, %s1927_s11 }
  0x14   : > { %s2288_s23 = scalar_select %p2063_p8, 1, 0 }
  0x15   : > { %s274_s26 = sor.u32 %s273_s21, %s272_s24  ;;  %p439_p10 = pnand %p1627_p7, %p438_p9 }
  0x16   : > { %2289 = sst [smem:[#allocation14_spill]] %s2288_s23  ;;  %p275_p11 = scmp.eq.s32.totalorder %s274_s26, 0 }
  0x17   : > { %442 = sbr.rel (%p439_p10) target bundleno = 287 (0x11f), region = 52  ;;  %s2078_s17 = sshll.u32 (!%p439_p10), %s1931_s12, 1 }
  0x18   : > { %s2072_s27 = scalar_select %p275_p11, %s1927_s11, %s277_s25  }
  0x19   : > { %p539_p12 = scmp.lt.s32.totalorder (!%p439_p10), %s1935_s13, 1  ;;  %p541_p13 = scmp.lt.s32.totalorder (!%p439_p10), %s2078_s17, 17 }
  0x1a   : > { %2290 = sst [smem:[#allocation15_spill]] %s2072_s27  ;;  %s550_s24 = sadd.s32 (!%p439_p10), 1, %s2078_s17 }
  0x1b   : > { %s563_s25 = sadd.s32 (!%p439_p10), 2, %s2078_s17  ;;  %p553_p0 = scmp.lt.s32.totalorder (!%p439_p10), %s550_s24, 17 }
  0x1c   : > { %v1648_v0 = vld [vmem:[%s2270_s6 + $0x4] sm:$0xf]  ;;  %vm622_vm0 = vcmask 1043456   ;;  %v1949_v1 = vmov 0.0   ;;  %v615_v2 = vld [vmem:[%s2270_s6] sm:$0xf] }
  0x1d   : > { %1701 = vmatprep.subr.mxu0 %v1949_v1  ;;  %1706 = vmatprep.subr.mxu1 %v1949_v1  ;;  %vm1950_vm1 = vmmov 0   ;;  %s540_s26 = scalar_select %p539_p12, %s1935_s13, 1  ;;  %vm618_vm2 = vcmask 31744   ;;  %v1653_v3 = vld [vmem:[%s2270_s6 + $0x8] sm:$0xf] }
  0x1e   : > { %1702 = vmatpush3.msk.msra.mxu0 %vm622_vm0, %v1648_v0  ;;  %1703 = vmatprep.mubr.msk.f32.mxu0 %vm1950_vm1, %v1949_v1  ;;  %s2308_s17 = smov (!%p541_p13, %s2078_s17), 17  ;;  %p566_p1 = scmp.lt.s32.totalorder %s563_s25, 17  ;;  %v1656_v4 = vld [vmem:[%s2270_s6 + $0xc] sm:$0xf]  ;;  %v1659_v8 = vld [vmem:[%s2270_s6 + $0x10] sm:$0xf] }
  0x1f   : > { %1707 = vmatpush3.msk.msra.mxu1 %vm622_vm0, %v615_v2  ;;  %1708 = vmatprep.mubr.msk.f32.mxu1 %vm1950_vm1, %v1949_v1  ;;  %s2099_s28 = smul.u32 36, %s540_s26  ;;  %s1631_s29 = sshll.u32 %s2308_s17, 1  ;;  %v1662_v9 = vld [vmem:[%s2270_s6 + $0x14] sm:$0xf]  ;;  %v1665_v12 = vld [vmem:[%s2270_s6 + $0x18] sm:$0xf] }
  0x20   : > { %1711 = vmatprep.subr.mxu0 %v1949_v1  ;;  %1716 = vmatprep.subr.mxu1 %v1949_v1  ;;  %s2310_s24 = smov (!%p553_p0, %s550_s24), 17  ;;  %s2312_s25 = smov (!%p566_p1, %s563_s25), 17  ;;  %v1668_v14 = vld [vmem:[%s2270_s6 + $0x1c] sm:$0xf]  ;;  %v1671_v16 = vld [vmem:[%s2270_s6 + $0x20] sm:$0xf] }
  0x21   : > { %s545_s18 = sadd.s32 %s2099_s28, %s1631_s29  ;;  %s1634_s30 = sshll.u32 %s2310_s24, 1  ;;  %v1674_v43 = vld [vmem:[%s2271_s7] ss:$0 sm:$0xff] }
  0x22   : > { %s1632_s21 = sshll.u32 %s545_s18, 3  ;;  %s557_s14 = sadd.s32 %s2099_s28, %s1634_s30 }
  0x23   : > { %s584_s15 = scalar_lea.vmem %s2267_s3, %s1632_s21  ;;  %s547_s11 = scalar_lea.vmem %s2264_s0, %s1632_s21 }
  0x24   : > { %v613_v5 = vld [vmem:[%s584_s15] sm:$0xff]  ;;  %s1637_s20 = sshll.u32 %s2312_s25, 1  ;;  %s2179_s26 = sand.u32 1, %s1923_s10  }
  0x25   : > { %v612_v6 = vld [vmem:[%s547_s11] sm:$0xff]  ;;  %1704 = vmatmul.mubr.msk.f32.vlgmr.msra.gmra.mxu0 %vm618_vm2, %v613_v5  ;;  %s570_s23 = sadd.s32 %s2099_s28, %s1637_s20  ;;  %s1677_s17 = sshll.u32 %s1935_s13, 3 }
  0x26   : > { %1709 = vmatmul.mubr.msk.f32.vlgmr.msra.gmra.mxu1 %vm618_vm2, %v612_v6  ;;  %v614_v7 = vld [vmem:[%s547_s11 + $0x1] sm:$0xff]  ;;  %1712 = vmatpush3.msk.msra.mxu0 %vm622_vm0, %v1653_v3  ;;  %s1635_s11 = sshll.u32 %s557_s14, 3  ;;  %s1638_s28 = sshll.u32 %s570_s23, 3 }
  0x27   : > { %1717 = vmatpush3.msk.msra.mxu1 %vm622_vm0, %v1656_v4  ;;  %1713 = vmatprep.mubr.msk.f32.mxu0 %vm1950_vm1, %v1949_v1  ;;  %s559_s29 = scalar_lea.vmem %s2265_s1, %s1635_s11  ;;  %s596_s25 = scalar_lea.vmem %s2268_s4, %s1635_s11 }
  0x28   : > { %1718 = vmatprep.mubr.msk.f32.mxu1 %vm1950_vm1, %v1949_v1  ;;  %1721 = vmatprep.subr.mxu0 %v1949_v1  ;;  %v851_v10 = vld [vmem:[%s559_s29] sm:$0xff]  ;;  %s572_s20 = scalar_lea.vmem %s2266_s2, %s1638_s28  ;;  %s609_s18 = scalar_lea.vmem %s2269_s5, %s1638_s28 }
  0x29   : > { %1726 = vmatprep.subr.mxu1 %v1949_v1  ;;  %1714 = vmatmul.mubr.msk.f32.vlgmr.msra.gmra.mxu0 %vm618_vm2, %v614_v7  ;;  %v852_v11 = vld [vmem:[%s596_s25] sm:$0xff]  ;;  %s1628_s25 = sshll.u32 %s2179_s26, 3  ;;  %s2184_s28 = sadd.s32 %s1931_s12, %s1677_s17 }
  0x2a   : > { %1722 = vmatpush3.msk.msra.mxu0 %vm622_vm0, %v1659_v8  ;;  %1723 = vmatprep.mubr.msk.f32.mxu0 %vm1950_vm1, %v1949_v1  ;;  %v853_v13 = vld [vmem:[%s559_s29 + $0x1] sm:$0xff]  ;;  %s1678_s13 = sshll.u32 %s2184_s28, 7  ;;  %s530_s15 = scalar_lea.vmem [#allocation2], %s1628_s25 }
  0x2b   : > { %1719 = vmatmul.mubr.msk.f32.vlgmr.msra.gmra.mxu1 %vm618_vm2, %v851_v10  ;;  %1731 = vmatprep.subr.mxu0 %v1949_v1  ;;  %v1091_v15 = vld [vmem:[%s572_s20] sm:$0xff]  ;;  %s1376_s19 = sshll.u32 %s530_s15, 4  ;;  %s2193_s11 = scalar_lea.hbm %s2272_s8, %s1678_s13  ;;  %s2195_s19 = int_to_ptr.vmem [resolvable:$true] %s1376_s19 }
  0x2c   : > { %1727 = vmatpush3.msk.msra.mxu1 %vm622_vm0, %v1662_v9  ;;  %1728 = vmatprep.mubr.msk.f32.mxu1 %vm1950_vm1, %v1949_v1  ;;  %v1092_v17 = vld [vmem:[%s609_s18] sm:$0xff]  ;;  %s1356_s23 = scalar_lea.sflag [#allocation3], %s2179_s26  ;;  %s1825_s27 = scalar_lea.vmem %s2195_s19, 128 }
  0x2d   : > { %1724 = vmatmul.mubr.msk.f32.vlgmr.msra.gmra.mxu0 %vm618_vm2, %v852_v11  ;;  %1736 = vmatprep.subr.mxu1 %v1949_v1  ;;  %v1093_v18 = vld [vmem:[%s572_s20 + $0x1] sm:$0xff]  ;;  %p1826_p2 = scmp.ne.s32.totalorder %s2195_s19, %s1825_s27  ;;  %s1951_s24 = smov [#allocation2]  }
  0x2e   : > { %1732 = vmatpush3.msk.msra.mxu0 %vm622_vm0, %v1665_v12  ;;  %1733 = vmatprep.mubr.msk.f32.mxu0 %vm1950_vm1, %v1949_v1  ;;  %s1829_s18 = sshll.u32 %s1951_s24, 4  ;;  %s1830_s18 = int_to_ptr.vmem [resolvable:$false] %s1829_s18 }
  0x2f   : > { %1729 = vmatmul.mubr.msk.f32.vlgmr.msra.gmra.mxu1 %vm618_vm2, %v853_v13  ;;  %1741 = vmatprep.subr.mxu0 %v1949_v1  ;;  %p1827_p4 = pnand %p1826_p2, %p2054_p3  ;;  %s1831_s29 = scalar_lea.vmem %s1830_s18, 256 }
  0x30   : > { %1737 = vmatpush3.msk.msra.mxu1 %vm622_vm0, %v1668_v14  ;;  %1738 = vmatprep.mubr.msk.f32.mxu1 %vm1950_vm1, %v1949_v1  ;;  %p1832_p6 = scmp.lt.s32.totalorder %s2195_s19, %s1830_s18  ;;  %p1833_p7 = scmp.lt.s32.totalorder %s1831_s29, %s1825_s27 }
  0x31   : > { %1734 = vmatmul.mubr.msk.f32.vlgmr.msra.gmra.mxu0 %vm618_vm2, %v1091_v15  ;;  %p1828_p5 = pneg %p1827_p4 }
  0x32   : > { %1742 = vmatpush3.msk.msra.mxu0 %vm622_vm0, %v1671_v16  ;;  %1743 = vmatprep.mubr.msk.f32.mxu0 %vm1950_vm1, %v1949_v1  ;;  %p1834_p9 = por %p1833_p7, %p1832_p6 }
  0x33   : > { %1739 = vmatmul.mubr.msk.f32.vlgmr.msra.gmra.mxu1 %vm618_vm2, %v1092_v17 }
  0x34   : > { %p1835_p10 = pnand %p1834_p9, %p1828_p5 }
  0x35   : > { %1744 = vmatmul.mubr.msk.f32.vlgmr.msra.gmra.mxu0 %vm618_vm2, %v1093_v18 }
  0xe5   : > { %v692_v19 = vpop.f32.mrf.mxu0 }
  0xe6   : > { %v768_v20 = vpop.f32.mrf.mxu1 }
  0xe7   : > { %v1705_v21 = vpop.f32.mrf.mxu0  ;;  %v769_v23 = vadd.f32 %v768_v20, %v692_v19 }
  0xe8   : > { %v1710_v22 = vpop.f32.mrf.mxu1 }
  0xe9   : > { %v846_v24 = vpop.f32.mrf.mxu0 }
  0xea   : > { %v850_v25 = vadd.f32 %v846_v24, %v769_v23 }
  0xeb   : > { %v928_v26 = vpop.f32.mrf.mxu1  ;;  %v1715_v27 = vpop.f32.mrf.mxu0 }
  0xec   : > { %v932_v28 = vadd.f32 %v928_v26, %v850_v25 }
  0xed   : > { %v1720_v29 = vpop.f32.mrf.mxu1  ;;  %v1007_v30 = vpop.f32.mrf.mxu0 }
  0xee   : > { %v1011_v31 = vadd.f32 %v1007_v30, %v932_v28 }
  0xef   : > { %v1086_v32 = vpop.f32.mrf.mxu1  ;;  %v1725_v33 = vpop.f32.mrf.mxu0 }
  0xf0   : > { %v1090_v34 = vadd.f32 %v1086_v32, %v1011_v31 }
  0xf1   : > { %v1730_v35 = vpop.f32.mrf.mxu1  ;;  %v1168_v36 = vpop.f32.mrf.mxu0 }
  0xf2   : > { %v1172_v37 = vadd.f32 %v1168_v36, %v1090_v34 }
  0xf3   : > { %v1247_v38 = vpop.f32.mrf.mxu1  ;;  %v1735_v39 = vpop.f32.mrf.mxu0 }
  0xf4   : > { %v1251_v40 = vadd.f32 %v1247_v38, %v1172_v37 }
  0xf5   : > { %v1740_v41 = vpop.f32.mrf.mxu1  ;;  %v1326_v42 = vpop.f32.mrf.mxu0 }
  0xf6   : > { %v1330_v44 = vadd.f32 %v1326_v42, %v1251_v40 }
  0xf7   : > { %v1745_v45 = vpop.f32.mrf.mxu0 }
  0xf8   : > { %v1338_v46 = vadd.f32 %v1674_v43, %v1330_v44 }
  0xfa   : > { %v1340_v47 = vrot.slane %v1338_v46, 4  ;;  %v1347_v48 = vmul.f32 %v1338_v46, %v1338_v46  ;;  %1339 = vst [vmem:[%s530_s15] sm:$0xff] %v1338_v46 }
  0xfb   : > { %1838 = shalt.err (!%p1835_p10)
}
  0xfc   : > { %s1839_s21 = scalar_lea.hbm %s2193_s11, 128  ;;  %s1843_s30 = scalar_lea.hbm %s2272_s8, 2048 }
  0xfd   : > { %p1840_p11 = scmp.ne.s32.totalorder %s2193_s11, %s1839_s21  ;;  %p1844_p0 = scmp.lt.s32.totalorder %s2193_s11, %s2272_s8 }
  0xfe   : > { %p1845_p1 = scmp.lt.s32.totalorder %s1843_s30, %s1839_s21 }
  0xff   : > { %p1841_p12 = pnand %p1840_p11, %p2054_p3 }
 0x100   : > { %p1846_p2 = por %p1845_p1, %p1844_p0 }
 0x101   : > { %p1842_p13 = pneg %p1841_p12 }
 0x103   : > { %p1847_p4 = pnand %p1846_p2, %p1842_p13 }
 0x105   : > { %1850 = shalt.err (!%p1847_p4)
}
 0x106   : > { %1747 = dma.vmem_to_hbm [thread:$0]  (%p2054_p3), %s2195_s19, 128, %s2193_s11, %s1356_s23   ;;  %v1341_v49 = vadd.f32 %v1340_v47, %v1338_v46  ;;  %v1348_v50 = vrot.slane %v1347_v48, 4 }
 0x107   : > { %s1629_s15 = sshll.u32 %s2179_s26, 1  ;;  %s1680_s12 = sshll.u32 %s2184_s28, 5 }
 0x108   : > { %v1342_v51 = vrot.slane %v1341_v49, 2  ;;  %v1349_v52 = vadd.f32 %v1348_v50, %v1347_v48  ;;  %s537_s20 = scalar_lea.vmem [#allocation4], %s1629_s15  ;;  %s1389_s11 = scalar_lea.hbm %s2273_s9, %s1680_s12 }
 0x109   : > { %s1391_s27 = sshll.u32 %s537_s20, 4  ;;  %s1361_s23 = scalar_lea.sflag [#allocation5], %s2179_s26  ;;  %s1392_s27 = int_to_ptr.vmem [resolvable:$true] %s1391_s27 }
 0x10a   : > { %v1343_v53 = vadd.f32 %v1342_v51, %v1341_v49  ;;  %v1350_v54 = vrot.slane %v1349_v52, 2  ;;  %s1851_s18 = scalar_lea.vmem %s1392_s27, 32  ;;  %s1952_s29 = smov [#allocation4]  }
 0x10b   : > { %p1852_p5 = scmp.ne.s32.totalorder %s1392_s27, %s1851_s18  ;;  %s1855_s28 = sshll.u32 %s1952_s29, 4  ;;  %s1856_s28 = int_to_ptr.vmem [resolvable:$false] %s1855_s28 }
 0x10c   : > { %v1344_v55 = vrot.slane %v1343_v53, 1  ;;  %v1351_v56 = vadd.f32 %v1350_v54, %v1349_v52  ;;  %s1857_s21 = scalar_lea.vmem %s1856_s28, 64  ;;  %p1858_p9 = scmp.lt.s32.totalorder %s1392_s27, %s1856_s28 }
 0x10d   : > { %p1853_p6 = pnand %p1852_p5, %p2054_p3  ;;  %p1859_p10 = scmp.lt.s32.totalorder %s1857_s21, %s1851_s18 }
 0x10e   : > { %v1345_v57 = vadd.f32 %v1344_v55, %v1343_v53  ;;  %v1352_v58 = vrot.slane %v1351_v56, 1 }
 0x10f   : > { %p1854_p7 = pneg %p1853_p6  ;;  %p1860_p11 = por %p1859_p10, %p1858_p9 }
 0x110   : > { %1346 = vst [vmem:[%s537_s20] sm:$0x1] %v1345_v57  ;;  %v1353_v59 = vadd.f32 %v1352_v58, %v1351_v56 }
 0x111   : > { %p1861_p12 = pnand %p1860_p11, %p1854_p7 }
 0x112   : > { %1354 = vst [vmem:[%s537_s20 + $0x1] sm:$0x1] %v1353_v59 }
 0x113   : > { %1864 = shalt.err (!%p1861_p12)
}
 0x114   : > { %s1865_s17 = scalar_lea.hbm %s1389_s11, 32  ;;  %s1869_s30 = scalar_lea.hbm %s2273_s9, 512 }
 0x115   : > { %p1866_p13 = scmp.ne.s32.totalorder %s1389_s11, %s1865_s17  ;;  %p1870_p2 = scmp.lt.s32.totalorder %s1389_s11, %s2273_s9 }
 0x116   : > { %p1871_p4 = scmp.lt.s32.totalorder %s1869_s30, %s1865_s17 }
 0x117   : > { %p1867_p0 = pnand %p1866_p13, %p2054_p3 }
 0x118   : > { %p1872_p5 = por %p1871_p4, %p1870_p2 }
 0x119   : > { %p1868_p1 = pneg %p1867_p0 }
 0x11b   : > { %p1873_p6 = pnand %p1872_p5, %p1868_p1 }
 0x11d   : > { %1876 = shalt.err (!%p1873_p6)
}
 0x11e   : > { %1748 = dma.vmem_to_hbm [thread:$0]  (%p2054_p3), %s1392_s27, 32, %s1389_s11, %s1361_s23  }
 0x11f PF: > { %s2291_s15 = sld [smem:[#allocation8_spill]]  ;;  %p1758_p7 = scmp.ge.s32.totalorder %s1947_s16, 2 }
 0x121   : > { %p1752_p9 = pnand %p1758_p7, %p2063_p8 }
 0x123   : > { %p1753_p10 = pneg %p1752_p9 }
 0x125   : > { %s1403_s20 = sand.u32 1, %s2291_s15  }
 0x126   : > { %s1404_s24 = scalar_lea.sflag [#allocation3], %s1403_s20 }
 0x127   : > { %1910 = dma.done.wait (%p1753_p10), %s1404_s24, 128  }
 0x128   : > { %1912 = vsyncadd (%p1753_p10), %s1404_s24, 4294967168  ;;  %s1413_s19 = scalar_lea.sflag [#allocation5], %s1403_s20 }
 0x129   : > { %1914 = dma.done.wait (%p1753_p10), %s1413_s19, 32  }
 0x12a   : > { %1916 = vsyncadd (%p1753_p10), %s1413_s19, 4294967264  ;;  %s26_s16 = sadd.s32 1, %s1947_s16   ;;  %s2293_s22 = sld [smem:[#allocation9_spill]] }
 0x12b   : > { %p23_p11 = scmp.ge.s32.totalorder %s26_s16, 18   ;;  %s2294_s11 = sld [smem:[#allocation15_spill]] }
 0x12c   : > { %s2295_s12 = sld [smem:[#allocation10_spill]]  ;;  %s2299_s30 = smov %s1923_s10 }
 0x12d   : > { %s2296_s13 = sld [smem:[#allocation11_spill]]  ;;  %25 = sbr.rel (!%p23_p11) target bundleno = 7 (0x7), region = 127 }
 0x12e   : > { %s2297_s14 = sld [smem:[#allocation12_spill]] }
 0x12f   : > { %s2298_s15 = sld [smem:[#allocation13_spill]] }
 0x130   : > { %s2300_s10 = smov %s2293_s22 }
 0x132   :  { %1418 = vsyncpa [#allocation3], 1 }
 0x133   :  { %1420 = vsyncpa [#allocation3 + $0x1], 1 }
 0x134   :  { %1421 = vsyncpa [#allocation5], 1 }
 0x135   :  { %1423 = vsyncpa [#allocation5 + $0x1], 1 }

</bundles_post_ra>
